<compile_context>
chip_gen: v7x
topology: tpu7x:2x2x1
jax: 0.10.0
libtpu: 0.0.40
codegen_flags: <defaults>
</compile_context>

<pallas_src>
import math

import jax
import jax.numpy as jnp
from jax.experimental import pallas as pl
from jax.experimental.pallas import tpu as pltpu


def mlp_kernel(x_ref, w1_ref, b1_ref, w2c_ref, b2_ref, o_ref):
    # x_ref : (bt, n_inputs)  native row-major X tile (f32 or bf16)
    # w1_ref: (H, n_inputs)   f32, native PyTorch Linear layout (no transpose)
    # b1_ref: (H, 1)          f32 column bias
    # w2c_ref: (H, 1)         f32 second-layer weights as a column
    # b2_ref: (1, 1) in SMEM  f32 scalar bias
    # o_ref : (1, bt)         f32 lane-dense output row
    #
    # Upcast then transpose in-kernel (XLU) so the batch sits on lanes; the
    # transpose hides under the X-tile DMA and avoids any wrapper-side x.T.
    xt = x_ref[...].astype(jnp.float32).T                               # (n_inputs, bt)
    h = jnp.dot(w1_ref[...], xt, preferred_element_type=jnp.float32)   # (H, bt)
    h = jnp.maximum(h + b1_ref[...], 0.0)
    # out_features == 1: VPU multiply + cross-sublane reduce, skip the MXU.
    y = jnp.sum(h * w2c_ref[...], axis=0, keepdims=True)               # (1, bt)
    o_ref[...] = jnp.maximum(y + b2_ref[0, 0], 0.0)


def _round_up(x, m):
    return ((x + m - 1) // m) * m


def _choose_tile(B, block_b):
    """Pick the lane-dense batch tile.

    * big tiles (up to block_b) so per-grid-step overhead amortizes,
    * >= 2 grid steps when B >= 256 so the "parallel" axis can shard across
      both v7x TensorCores,
    * always a multiple of 128 (remainder of B handled by padding).
    """
    if B < 256:
        return 128
    half = _round_up((B + 1) // 2, 128)
    return max(128, min(block_b, half))


def network_forward(x, w1, b1, w2, b2, *, block_b=4096, input_dtype=None):
    """Forward pass of `Network`; returns (B, 1) exactly like the PyTorch module.

    Pass input_dtype=jnp.bfloat16 on v6e/v7x to halve HBM traffic on the
    dominant operand (X); all in-kernel math stays f32.
    """
    B, n_inputs = x.shape
    H = w1.shape[0]

    if input_dtype is not None:
        x = x.astype(input_dtype)

    bt = _choose_tile(B, block_b)
    B_pad = _round_up(B, bt)
    if B_pad != B:
        x = jnp.pad(x, ((0, B_pad - B), (0, 0)))
    grid = (B_pad // bt,)

    # One-time layout prep of the TINY operands only; X stays in native layout.
    w1f = w1.astype(jnp.float32)                      # (H, n_inputs)
    b1c = b1.reshape(H, 1).astype(jnp.float32)
    w2c = w2.reshape(H, 1).astype(jnp.float32)
    b2s = b2.reshape(1, 1).astype(jnp.float32)

    vmem = pltpu.MemorySpace.VMEM
    smem = pltpu.MemorySpace.SMEM

    flops = 2 * B_pad * n_inputs * H + 5 * B_pad * H + 2 * B_pad
    bytes_accessed = (x.size * x.dtype.itemsize
                      + 4 * (w1.size + b1.size + w2.size + b2.size + B_pad))

    out_row = pl.pallas_call(
        mlp_kernel,
        out_shape=jax.ShapeDtypeStruct((1, B_pad), jnp.float32),
        grid_spec=pltpu.PrefetchScalarGridSpec(
            num_scalar_prefetch=0,
            grid=grid,
            in_specs=[
                pl.BlockSpec((bt, n_inputs), lambda i: (i, 0), memory_space=vmem),
                pl.BlockSpec((H, n_inputs), lambda i: (0, 0), memory_space=vmem),
                pl.BlockSpec((H, 1), lambda i: (0, 0), memory_space=vmem),
                pl.BlockSpec((H, 1), lambda i: (0, 0), memory_space=vmem),
                pl.BlockSpec(memory_space=smem),       # b2 scalar in SMEM
            ],
            out_specs=pl.BlockSpec((1, bt), lambda i: (0, i), memory_space=vmem),
        ),
        compiler_params=pltpu.CompilerParams(
            dimension_semantics=("parallel",)),
        cost_estimate=pl.CostEstimate(
            flops=flops, transcendentals=0, bytes_accessed=bytes_accessed),
    )(x, w1f, b1c, w2c, b2s)

    # (1, B_pad) -> (B, 1): drop padding, match the nn.Module output shape.
    return out_row[0, :B].reshape(B, 1)


def init_params(key, n_inputs, hidden):
    """Deterministic init mirroring the PyTorch module's __init__ (same schemes)."""
    k1, k2, k3, k4 = jax.random.split(key, 4)

    # hidden1: kaiming_uniform_(nonlinearity='relu') -> bound = sqrt(6 / fan_in)
    bound1 = math.sqrt(6.0 / n_inputs)
    w1 = jax.random.uniform(k1, (hidden, n_inputs), jnp.float32, -bound1, bound1)
    bb1 = 1.0 / math.sqrt(n_inputs)
    b1 = jax.random.uniform(k2, (hidden,), jnp.float32, -bb1, bb1)

    # output: xavier_uniform_ -> bound = sqrt(6 / (fan_in + fan_out))
    bound2 = math.sqrt(6.0 / (hidden + 1))
    w2 = jax.random.uniform(k3, (1, hidden), jnp.float32, -bound2, bound2)
    bb2 = 1.0 / math.sqrt(hidden)
    b2 = jax.random.uniform(k4, (1,), jnp.float32, -bb2, bb2)

    return w1, b1, w2, b2


if __name__ == "__main__":
    # Small shapes consistent with the module: batch=8, n_inputs=16, H=32.
    n_inputs = 16
    H = 32
    batch = 8

    key = jax.random.PRNGKey(0)
    kx, kp, kx2 = jax.random.split(key, 3)
    x = jax.random.normal(kx, (batch, n_inputs), jnp.float32)
    w1, b1, w2, b2 = init_params(kp, n_inputs, H)

    def ref_forward(xr):
        h = jnp.maximum(xr @ w1.T + b1, 0.0)
        return jnp.maximum(h @ w2.T + b2, 0.0)

    # 1) Small f32 path (grid degenerates to a single padded tile).
    out = jax.block_until_ready(network_forward(x, w1, b1, w2, b2))
    assert out.shape == (batch, 1)
    assert jnp.allclose(out, ref_forward(x), atol=1e-4), "f32 mismatch vs reference"

    # 2) Awkward batch (not a multiple of 128) + bf16 X: exercises cdiv+pad,
    #    the >=2-step parallel grid, and the reduced-HBM input path.
    batch2 = 1000
    x2 = jax.random.normal(kx2, (batch2, n_inputs), jnp.float32)
    out2 = jax.block_until_ready(
        network_forward(x2, w1, b1, w2, b2, input_dtype=jnp.bfloat16))
    ref2 = ref_forward(x2.astype(jnp.bfloat16).astype(jnp.float32))
    assert out2.shape == (batch2, 1)
    assert jnp.allclose(out2, ref2, atol=1e-4), "bf16 mismatch vs reference"

    print("KERNEL_OK")
</pallas_src>

<mosaic_0001>
module attributes {stable_mosaic.version = 11 : i64} {
  func.func @mlp_kernel(%arg0: i32, %arg1: memref<128x16xf32, #tpu.memory_space<vmem>>, %arg2: memref<32x16xf32, #tpu.memory_space<vmem>>, %arg3: memref<32x1xf32, #tpu.memory_space<vmem>>, %arg4: memref<32x1xf32, #tpu.memory_space<vmem>>, %arg5: memref<1x1xf32, #tpu.memory_space<smem>>, %arg6: memref<1x128xf32, #tpu.memory_space<vmem>>) attributes {dimension_semantics = [#tpu.dimension_semantics<parallel>], iteration_bounds = array<i64: 1>, scalar_prefetch = 0 : i64, scratch_operands = 0 : i64, tpu.core_type = #tpu.core_type<tc>, window_params = [{transform_indices = @transform_0, window_bounds = array<i64: 128, 16>}, {pipeline_mode = #tpu.pipeline_mode<synchronous>, transform_indices = @transform_1, window_bounds = array<i64: 32, 16>}, {pipeline_mode = #tpu.pipeline_mode<synchronous>, transform_indices = @transform_2, window_bounds = array<i64: 32, 1>}, {pipeline_mode = #tpu.pipeline_mode<synchronous>, transform_indices = @transform_3, window_bounds = array<i64: 32, 1>}, {transform_indices = @transform_4, window_bounds = array<i64: 1, 1>}, {transform_indices = @transform_5, window_bounds = array<i64: 1, 128>}]} {
    %c0 = arith.constant 0 : index
    %c0_0 = arith.constant 0 : index
    %0 = vector.load %arg1[%c0, %c0_0] : memref<128x16xf32, #tpu.memory_space<vmem>>, vector<128x16xf32>
    %1 = tpu.transpose %0, [1, 0] : vector<128x16xf32> -> vector<16x128xf32>
    %c0_1 = arith.constant 0 : index
    %c0_2 = arith.constant 0 : index
    %2 = vector.load %arg2[%c0_1, %c0_2] : memref<32x16xf32, #tpu.memory_space<vmem>>, vector<32x16xf32>
    %cst = arith.constant dense<0.000000e+00> : vector<32x128xf32>
    %3 = tpu.matmul %2, %1, %cst {dimension_numbers = #tpu.dot_dimension_numbers<[1], [0], [0], [1], [0, 0, 1, 1], [], []>} : vector<32x16xf32>, vector<16x128xf32>, vector<32x128xf32> -> vector<32x128xf32>
    %c0_3 = arith.constant 0 : index
    %c0_4 = arith.constant 0 : index
    %4 = vector.load %arg3[%c0_3, %c0_4] : memref<32x1xf32, #tpu.memory_space<vmem>>, vector<32x1xf32>
    %5 = vector.broadcast %4 : vector<32x1xf32> to vector<32x128xf32>
    %6 = arith.addf %3, %5 : vector<32x128xf32>
    %cst_5 = arith.constant 0.000000e+00 : f32
    %7 = vector.broadcast %cst_5 : f32 to vector<32x128xf32>
    %8 = arith.maximumf %6, %7 : vector<32x128xf32>
    %c0_6 = arith.constant 0 : index
    %c0_7 = arith.constant 0 : index
    %9 = vector.load %arg4[%c0_6, %c0_7] : memref<32x1xf32, #tpu.memory_space<vmem>>, vector<32x1xf32>
    %10 = vector.broadcast %9 : vector<32x1xf32> to vector<32x128xf32>
    %11 = arith.mulf %8, %10 : vector<32x128xf32>
    %cst_8 = arith.constant dense<0.000000e+00> : vector<128xf32>
    %12 = vector.multi_reduction <add>, %11, %cst_8 [0] : vector<32x128xf32> to vector<128xf32>
    %13 = vector.shape_cast %12 : vector<128xf32> to vector<1x128xf32>
    %c0_9 = arith.constant 0 : index
    %c0_10 = arith.constant 0 : index
    %14 = memref.load %arg5[%c0_9, %c0_10] : memref<1x1xf32, #tpu.memory_space<smem>>
    %15 = vector.broadcast %14 : f32 to vector<1x128xf32>
    %16 = arith.addf %13, %15 : vector<1x128xf32>
    %cst_11 = arith.constant 0.000000e+00 : f32
    %17 = vector.broadcast %cst_11 : f32 to vector<1x128xf32>
    %18 = arith.maximumf %16, %17 : vector<1x128xf32>
    %c0_12 = arith.constant 0 : index
    %c0_13 = arith.constant 0 : index
    %19 = vector.load %arg6[%c0_12, %c0_13] : memref<1x128xf32, #tpu.memory_space<vmem>>, vector<1x128xf32>
    tpu.vector_store %arg6[%c0_12, %c0_13], %18 {strides = array<i32>} : memref<1x128xf32, #tpu.memory_space<vmem>>, vector<1x128xf32>,
    return
  }
  func.func @transform_0(%arg0: i32) -> (i32, i32) {
    %c0_i32 = arith.constant 0 : i32
    %c0_i32_0 = arith.constant 0 : i32
    return %arg0, %c0_i32 : i32, i32
  }
  func.func @transform_1(%arg0: i32) -> (i32, i32) {
    %c0_i32 = arith.constant 0 : i32
    %c0_i32_0 = arith.constant 0 : i32
    %c0_i32_1 = arith.constant 0 : i32
    return %c0_i32, %c0_i32_0 : i32, i32
  }
  func.func @transform_2(%arg0: i32) -> (i32, i32) {
    %c0_i32 = arith.constant 0 : i32
    %c0_i32_0 = arith.constant 0 : i32
    %c0_i32_1 = arith.constant 0 : i32
    return %c0_i32, %c0_i32_0 : i32, i32
  }
  func.func @transform_3(%arg0: i32) -> (i32, i32) {
    %c0_i32 = arith.constant 0 : i32
    %c0_i32_0 = arith.constant 0 : i32
    %c0_i32_1 = arith.constant 0 : i32
    return %c0_i32, %c0_i32_0 : i32, i32
  }
  func.func @transform_4(%arg0: i32) -> (i32, i32) {
    %c0_i32 = arith.constant 0 : i32
    %c0_i32_0 = arith.constant 0 : i32
    %c0_i32_1 = arith.constant 0 : i32
    return %c0_i32, %c0_i32_0 : i32, i32
  }
  func.func @transform_5(%arg0: i32) -> (i32, i32) {
    %c0_i32 = arith.constant 0 : i32
    %c0_i32_0 = arith.constant 0 : i32
    return %c0_i32, %arg0 : i32, i32
  }
}

</mosaic_0001>

<bundles_post_ra>
// kernel: tpu_custom_call.1
= control target key start
LH: loop header
LB: loop body
LE: loop exit
PB: predicated region body
PF: predicated region fallthrough
CT: control target
= control target key end

     0   :  { %vm66_vm0 = vcmask 130048   ;;  %v442_v6 = vmov 0   ;;  %s647_s0 = inlined_call_operand.vmem [shape: f32[128,16], index: 0, kind: input, shape index: {}]   ;;  %s648_s1 = inlined_call_operand.vmem [shape: f32[32,16], index: 1, kind: input, shape index: {}]   ;;  %s649_s2 = inlined_call_operand.vmem [shape: f32[32,1], index: 2, kind: input, shape index: {}]   ;;  %s650_s3 = inlined_call_operand.vmem [shape: f32[32,1], index: 3, kind: input, shape index: {}]   ;;  %s651_s4 = inlined_call_operand.<no memory space> [shape: f32[1,1], index: 4, kind: input, shape index: {}]   ;;  %s652_s5 = inlined_call_operand.hbm [shape: f32[1,128], index: 5, kind: output, shape index: {}]  }
   0x1   :  { %v22_v0 = vld [vmem:[%s647_s0] sm:$0xff]  ;;  %v23_v1 = vld [vmem:[%s647_s0 + $0x8] sm:$0xff]  ;;  %v24_v2 = vld [vmem:[%s647_s0 + $0x10] sm:$0xff]  ;;  %416 = vset.pattern.permute.xlu0 %v442_v6  ;;  %417 = vset.pattern.permute.xlu1 %v442_v6 }
   0x2   :  { %v350_v3 = vpack.c.bf16 %v23_v1, %v22_v0  ;;  %vm485_vm1 = vmpackc.low %vm66_vm0, %vm66_vm0  ;;  %v25_v5 = vld [vmem:[%s647_s0 + $0x18] sm:$0xff]  ;;  %v38_v8 = vld [vmem:[%s648_s1] sm:$0xff] }
   0x3   :  { %v356_v7 = vpack.c.bf16 %v25_v5, %v24_v2  ;;  %v26_v9 = vld [vmem:[%s647_s0 + $0x20] sm:$0xff]  ;;  %v27_v10 = vld [vmem:[%s647_s0 + $0x28] sm:$0xff]  ;;  %344 = vmatprep.mubr.msk.f32.mxu0 %vm66_vm0, %v38_v8  ;;  %v40_v11 = vld [vmem:[%s648_s1 + $0x10] sm:$0xff] }
   0x4   :  { %352 = vmatprep.subr.msk.bf16.mxu0 %vm485_vm1, %v350_v3  ;;  %398 = vmatprep.subr.msk.bf16.mxu1 %vm485_vm1, %v350_v3  ;;  %v42_v12 = vld [vmem:[%s649_s2] sm:$0xff]  ;;  %v44_v13 = vld [vmem:[%s649_s2 + $0x10] sm:$0xff]  ;;  %v362_v14 = vpack.c.bf16 %v27_v10, %v26_v9 }
   0x5   :  { %355 = vmatpush3.bf16.xpose.msk.msra.mxu0 %vm485_vm1, %v350_v3  ;;  %406 = vmatpush3.bf16.xpose.msk.msra.mxu1 %vm485_vm1, %v350_v3 }
   0x6   :  { %358 = vmatprep.subr.msk.bf16.mxu0 %vm485_vm1, %v356_v7  ;;  %399 = vmatprep.subr.msk.bf16.mxu1 %vm485_vm1, %v356_v7 }
   0x7   :  { %347 = vmatprep.mubr.msk.f32.mxu1 %vm66_vm0, %v40_v11  ;;  %48 = vperm.xlu0 %416, %v42_v12  }
   0x8   :  { %58 = vperm.xlu1 %417, %v44_v13  }
   0x9   :  { %11 = vsyncpa [#allocation4], 0  ;;  %v43_v15 = vld [vmem:[%s649_s2 + $0x8] sm:$0xff]  ;;  %v45_v16 = vld [vmem:[%s649_s2 + $0x18] sm:$0xff]  ;;  %v254_v6 = vstv %s651_s4  ;;  %s443_s21 = smov [#allocation3]  }
   0xa   :  { %v28_v17 = vld [vmem:[%s647_s0 + $0x30] sm:$0xff]  ;;  %v29_v18 = vld [vmem:[%s647_s0 + $0x38] sm:$0xff]  ;;  %v216_v19 = vld [vmem:[%s650_s3] sm:$0xff]  ;;  %s264_s22 = sshll.u32 %s443_s21, 4  ;;  %s265_s22 = int_to_ptr.vmem [resolvable:$true] %s264_s22 }
   0xb   :  { %53 = vperm.xlu0 %416, %v43_v15   ;;  %v217_v20 = vld [vmem:[%s650_s3 + $0x8] sm:$0xff]  ;;  %v368_v21 = vpack.c.bf16 %v29_v18, %v28_v17  ;;  %v218_v22 = vld [vmem:[%s650_s3 + $0x10] sm:$0xff]  ;;  %v219_v23 = vld [vmem:[%s650_s3 + $0x18] sm:$0xff]  ;;  %s418_s23 = scalar_lea.vmem %s265_s22, 16  ;;  %s422_s24 = scalar_lea.vmem %s265_s22, 32 }
   0xc   :  { %63 = vperm.xlu1 %417, %v45_v16   ;;  %v30_v24 = vld [vmem:[%s647_s0 + $0x40] sm:$0xff]  ;;  %v31_v25 = vld [vmem:[%s647_s0 + $0x48] sm:$0xff]  ;;  %v32_v27 = vld [vmem:[%s647_s0 + $0x50] sm:$0xff]  ;;  %p419_p0 = scmp.ne.s32.totalorder %s265_s22, %s418_s23  ;;  %p423_p1 = scmp.lt.s32.totalorder %s265_s22, %s265_s22 }
   0xd   :  { %361 = vmatpush3.bf16.xpose.msk.msra.mxu0 %vm485_vm1, %v356_v7  ;;  %407 = vmatpush3.bf16.xpose.msk.msra.mxu1 %vm485_vm1, %v356_v7  ;;  %v374_v26 = vpack.c.bf16 %v31_v25, %v30_v24  ;;  %v33_v28 = vld [vmem:[%s647_s0 + $0x58] sm:$0xff]  ;;  %v34_v30 = vld [vmem:[%s647_s0 + $0x60] sm:$0xff]  ;;  %v35_v31 = vld [vmem:[%s647_s0 + $0x68] sm:$0xff]  ;;  %p424_p2 = scmp.lt.s32.totalorder %s422_s24, %s418_s23 }
   0xe   :  { %364 = vmatprep.subr.msk.bf16.mxu0 %vm485_vm1, %v362_v14  ;;  %400 = vmatprep.subr.msk.bf16.mxu1 %vm485_vm1, %v362_v14  ;;  %v380_v29 = vpack.c.bf16 %v33_v28, %v32_v27  ;;  %v386_v32 = vpack.c.bf16 %v35_v31, %v34_v30  ;;  %v36_v33 = vld [vmem:[%s647_s0 + $0x70] sm:$0xff]  ;;  %v37_v34 = vld [vmem:[%s647_s0 + $0x78] sm:$0xff]  ;;  %v39_v36 = vld [vmem:[%s648_s1 + $0x8] sm:$0xff] }
   0xf   :  { %222 = vperm.xlu0 %416, %v216_v19   ;;  %v392_v35 = vpack.c.bf16 %v37_v34, %v36_v33  ;;  %v41_v37 = vld [vmem:[%s648_s1 + $0x18] sm:$0xff]  ;;  %p425_p3 = por %p424_p2, %p423_p1 }
  0x10   :  { %227 = vperm.xlu1 %417, %v217_v20  }
  0x11   :  { %p426_p4 = pnand %p425_p3, %p419_p0 }
  0x13   :  { %232 = vperm.xlu0 %416, %v218_v22  }
  0x14   :  { %237 = vperm.xlu1 %417, %v219_v23  }
  0x15   :  { %367 = vmatpush3.bf16.xpose.msk.msra.mxu0 %vm485_vm1, %v362_v14  ;;  %408 = vmatpush3.bf16.xpose.msk.msra.mxu1 %vm485_vm1, %v362_v14 }
  0x16   :  { %370 = vmatprep.subr.msk.bf16.mxu0 %vm485_vm1, %v368_v21  ;;  %401 = vmatprep.subr.msk.bf16.mxu1 %vm485_vm1, %v368_v21 }
  0x1d   :  { %373 = vmatpush3.bf16.xpose.msk.msra.mxu0 %vm485_vm1, %v368_v21  ;;  %409 = vmatpush3.bf16.xpose.msk.msra.mxu1 %vm485_vm1, %v368_v21 }
  0x1e   :  { %376 = vmatprep.subr.msk.bf16.mxu0 %vm485_vm1, %v374_v26  ;;  %402 = vmatprep.subr.msk.bf16.mxu1 %vm485_vm1, %v374_v26 }
  0x25   :  { %379 = vmatpush3.bf16.xpose.msk.msra.mxu0 %vm485_vm1, %v374_v26  ;;  %410 = vmatpush3.bf16.xpose.msk.msra.mxu1 %vm485_vm1, %v374_v26 }
  0x26   :  { %382 = vmatprep.subr.msk.bf16.mxu0 %vm485_vm1, %v380_v29  ;;  %403 = vmatprep.subr.msk.bf16.mxu1 %vm485_vm1, %v380_v29 }
  0x2d   :  { %385 = vmatpush3.bf16.xpose.msk.msra.mxu0 %vm485_vm1, %v380_v29  ;;  %411 = vmatpush3.bf16.xpose.msk.msra.mxu1 %vm485_vm1, %v380_v29 }
  0x2e   :  { %388 = vmatprep.subr.msk.bf16.mxu0 %vm485_vm1, %v386_v32  ;;  %404 = vmatprep.subr.msk.bf16.mxu1 %vm485_vm1, %v386_v32 }
  0x35   :  { %391 = vmatpush3.bf16.xpose.msk.msra.mxu0 %vm485_vm1, %v386_v32  ;;  %412 = vmatpush3.bf16.xpose.msk.msra.mxu1 %vm485_vm1, %v386_v32 }
  0x36   :  { %394 = vmatprep.subr.msk.bf16.mxu0 %vm485_vm1, %v392_v35  ;;  %405 = vmatprep.subr.msk.bf16.mxu1 %vm485_vm1, %v392_v35 }
  0x3d   :  { %397 = vmatpush3.bf16.xpose.msk.msra.mxu0 %vm485_vm1, %v392_v35  ;;  %413 = vmatpush3.bf16.xpose.msk.msra.mxu1 %vm485_vm1, %v392_v35 }
  0x44   :  { %345 = vmatmul.mubr.msk.f32.vlgmr.msra.gmra.mrb[0].mxu0 %vm66_vm0, %v39_v36  ;;  %348 = vmatmul.mubr.msk.f32.vlgmr.msra.gmra.mrb[0].mxu1 %vm66_vm0, %v41_v37 }
  0x86   :  { %v49_v38 = vpop.permute.xlu0 %48 }
  0x87   :  { %v59_v39 = vpop.permute.xlu1 %58 }
  0x8a   :  { %v54_v40 = vpop.permute.xlu0 %53 }
  0x8b   :  { %v64_v41 = vpop.permute.xlu1 %63 }
  0x8e   :  { %v223_v42 = vpop.permute.xlu0 %222 }
  0x8f   :  { %v228_v51 = vpop.permute.xlu1 %227 }
  0x92   :  { %v233_v58 = vpop.permute.xlu0 %232 }
  0x93   :  { %v238_v61 = vpop.permute.xlu1 %237 }
 0x117   :  { %v346_v43 = vpop.f32.mrb[0].mxu0  ;;  %v349_v44 = vpop.f32.mrb[0].mxu1 }
 0x118   :  { %v199_v45 = vadd.f32 %v346_v43, %v54_v40  ;;  %v193_v46 = vpop.f32.mrb[1].mxu0  ;;  %v203_v47 = vpop.f32.mrb[1].mxu1  ;;  %v209_v48 = vadd.f32 %v349_v44, %v64_v41 }
 0x119   :  { %v194_v49 = vadd.f32 %v193_v46, %v49_v38  ;;  %v204_v50 = vadd.f32 %v203_v47, %v59_v39 }
 0x11a   :  { %v213_v52 = vmax.f32 %v199_v45, 0.0  ;;  %v215_v56 = vmax.f32 %v209_v48, 0.0 }
 0x11b   :  { %v212_v53 = vmax.f32 %v194_v49, 0.0  ;;  %v214_v54 = vmax.f32 %v204_v50, 0.0 }
 0x11c   :  { %v241_v55 = vmul.f32 %v228_v51, %v213_v52  ;;  %v243_v62 = vmul.f32 %v238_v61, %v215_v56 }
 0x11d   :  { %v240_v57 = vmul.f32 %v223_v42, %v212_v53  ;;  %v242_v60 = vmul.f32 %v233_v58, %v214_v54 }
 0x11f   :  { %v244_v59 = vadd.f32 %v241_v55, %v240_v57 }
 0x121   :  { %v245_v63 = vadd.f32 %v244_v59, %v242_v60 }
 0x123   :  { %v246_v0 = vadd.f32 %v245_v63, %v243_v62 }
 0x125   :  { %v247_v1 = vrot.slane %v246_v0, 4 }
 0x127   :  { %v248_v2 = vadd.f32 %v247_v1, %v246_v0 }
 0x129   :  { %v249_v3 = vrot.slane %v248_v2, 2 }
 0x12b   :  { %v250_v4 = vadd.f32 %v249_v3, %v248_v2 }
 0x12d   :  { %v251_v5 = vrot.slane %v250_v4, 1 }
 0x12f   :  { %v252_v7 = vadd.f32 %v251_v5, %v250_v4 }
 0x131   :  { %v255_v8 = vadd.f32 %v254_v6, %v252_v7 }
 0x133   :  { %v256_v9 = vmax.f32 %v255_v8, 0.0 }
 0x135   :  { %257 = vst [vmem:[#allocation3] sm:$0x1] %v256_v9 }
 0x136   :  { %429 = shalt.err (!%p426_p4)
}
 0x137   :  { %s430_s27 = scalar_lea.hbm %s652_s5, 16 }
 0x138   :  { %p431_p5 = scmp.ne.s32.totalorder %s652_s5, %s430_s27  ;;  %p434_p6 = scmp.lt.u32.totalorder %s430_s27, %s652_s5 }
 0x13a   :  { %p436_p7 = pnand %p434_p6, %p431_p5 }
 0x13c   :  { %439 = shalt.err (!%p436_p7)
}
 0x13d   :  { %267 = dma.vmem_to_hbm [thread:$0]  %s265_s22, 16, %s652_s5, [#allocation4]  }
 0x13e   :  { %440 = dma.done.wait [#allocation4], 16  }
 0x13f   :  { %441 = vsyncadd [#allocation4], 4294967280 }
 0x140   :  { %271 = vsyncpa [#allocation4], 1 }

</bundles_post_ra>
